<compile_context>
chip_gen: v5e
topology: v5e:2x2
jax: 0.10.0
libtpu: 0.0.40
codegen_flags: <defaults>
</compile_context>

<pallas_src>
import functools
import numpy as np
import jax
import jax.numpy as jnp
from jax.experimental import pallas as pl
from jax.experimental.pallas import tpu as pltpu


# ----------------------------------------------------------------------------
# Deterministic parameter init (mirrors unitary_init from quaternion_ops.py)
# ----------------------------------------------------------------------------
def unitary_init(out_features, in_features, kernel_size, rng):
    """Returns (r, i, j, k) numpy arrays of shape (out, in, kh, kw), unit-norm quats."""
    kernel_shape = (out_features, in_features) + tuple(kernel_size)
    n = int(np.prod(kernel_shape))
    v_r = rng.uniform(-1.0, 1.0, n)
    v_i = rng.uniform(-1.0, 1.0, n)
    v_j = rng.uniform(-1.0, 1.0, n)
    v_k = rng.uniform(-1.0, 1.0, n)
    norm = np.sqrt(v_r ** 2 + v_i ** 2 + v_j ** 2 + v_k ** 2) + 1e-4
    v_r, v_i, v_j, v_k = v_r / norm, v_i / norm, v_j / norm, v_k / norm
    return (v_r.reshape(kernel_shape).astype(np.float32),
            v_i.reshape(kernel_shape).astype(np.float32),
            v_j.reshape(kernel_shape).astype(np.float32),
            v_k.reshape(kernel_shape).astype(np.float32))


def build_quaternion_weight(r_w, i_w, j_w, k_w):
    """Assemble the full conv weight exactly as quaternion_conv() does in PyTorch.

    r/i/j/k: (Cout/4, Cin/4, KH, KW)  ->  returns (Cout, Cin, KH, KW)
    """
    cat_r = jnp.concatenate([r_w, -i_w, -j_w, -k_w], axis=1)
    cat_i = jnp.concatenate([i_w,  r_w, -k_w,  j_w], axis=1)
    cat_j = jnp.concatenate([j_w,  k_w,  r_w, -i_w], axis=1)
    cat_k = jnp.concatenate([k_w, -j_w,  i_w,  r_w], axis=1)
    return jnp.concatenate([cat_r, cat_i, cat_j, cat_k], axis=0)


# ----------------------------------------------------------------------------
# Pallas kernel: one clean MXU matmul + bias add + lane-dense store per grid step
# ----------------------------------------------------------------------------
def _qconv_mm_kernel(lhs_ref, w_ref, b_ref, o_ref):
    # lhs_ref: (Mb, KH*Wp*Cin)      row-block of images (one row per (n, oh))
    # w_ref  : (KH*Wp*Cin, OW*Cout) block-Toeplitz weight matrix (revisited)
    # b_ref  : (1, OW*Cout)         bias tiled over ow (f32)
    # o_ref  : (Mb, OW*Cout)        lane-dense output row-block
    acc = jnp.dot(lhs_ref[...], w_ref[...], preferred_element_type=jnp.float32)
    o_ref[...] = (acc + b_ref[...]).astype(o_ref.dtype)


# ----------------------------------------------------------------------------
# Helpers: generation awareness + VMEM accounting
# ----------------------------------------------------------------------------
def _round_up(a, b):
    return -(-a // b) * b


def _vmem_block_bytes(rows, cols, itemsize):
    """Lane/sublane-padded VMEM size of one (rows, cols) f-dtype block."""
    return _round_up(max(int(rows), 1), 8) * _round_up(max(int(cols), 1), 128) * itemsize


def _num_tensorcores_per_device():
    """2 TensorCores per chip only on v7x-class parts; 1 on v5e/v6e (and on failure)."""
    try:
        kind = jax.devices()[0].device_kind.lower()
    except Exception:
        return 1
    return 2 if ("v7" in kind or "7x" in kind) else 1


def _footprint_bytes(m_blk, k_tot, owc, in_itemsize):
    """Total VMEM footprint with Pallas double-buffering of every blocked operand."""
    lhs = _vmem_block_bytes(m_blk, k_tot, in_itemsize)
    wgt = _vmem_block_bytes(k_tot, owc, in_itemsize)
    bias = _vmem_block_bytes(1, owc, 4)
    out = _vmem_block_bytes(m_blk, owc, 4)
    return 2 * (lhs + wgt + bias + out)


def _choose_grid_steps(m, k_tot, owc, in_itemsize, vmem_budget_bytes=8 << 20):
    """Pick the grid length over the M=(N*OH) row axis.

    - 1 step on single-TensorCore parts (v5e/v6e): no wasted ~0.35us prologue/epilogue.
    - num_tc steps on v7x so dimension_semantics=('parallel',) shards across cores.
    - grow the step count only if the double-buffered block footprint exceeds budget.
    Row blocks must stay multiples of 8 (sublane constraint) unless a single full block.
    """
    num_tc = _num_tensorcores_per_device()
    steps = 1
    if num_tc > 1 and m % num_tc == 0 and (m // num_tc) % 8 == 0:
        steps = num_tc
    while _footprint_bytes(m // steps, k_tot, owc, in_itemsize) > vmem_budget_bytes:
        nxt = steps * 2
        if m % nxt != 0 or (m // nxt) % 8 != 0:
            break
        steps = nxt
    return steps


# ----------------------------------------------------------------------------
# Wrapper: wrapper-side packing (kn2row), then one Pallas call
# ----------------------------------------------------------------------------
def quaternion_conv2d_pallas(x_nchw, r_w, i_w, j_w, k_w, bias,
                             stride=1, padding=0, dilation=1, groups=1,
                             use_bf16_operands=False):
    """Quaternion conv2d (rotation=False path). x_nchw: (N, Cin, H, W) float32."""
    assert groups == 1  # TODO(synk): grouped quaternion conv not implemented (module default groups=1)
    N, Cin, H, W = x_nchw.shape
    w_full = build_quaternion_weight(r_w, i_w, j_w, k_w)        # (Cout, Cin, KH, KW)
    Cout, _, KH, KW = w_full.shape

    # --- plain-JAX packing (XLA handles this cheap, one-shot layout work) ----------
    # NCHW -> NHWC + spatial zero-pad
    x = jnp.transpose(x_nchw, (0, 2, 3, 1)).astype(jnp.float32)
    x = jnp.pad(x, ((0, 0), (padding, padding), (padding, padding), (0, 0)))
    Hp, Wp = H + 2 * padding, W + 2 * padding
    OH = (Hp - dilation * (KH - 1) - 1) // stride + 1
    OW = (Wp - dilation * (KW - 1) - 1) // stride + 1

    K_tot = KH * Wp * Cin          # contraction dim of the block-Toeplitz matmul
    OWC = OW * Cout                # lane-dense output width
    M = N * OH                     # matmul M dim (one row per (image, output row))
    # NOTE: if OWC is not a multiple of 128 (other layer configs), the kernel is still
    # correct but falls back to masked vst stores (perf cliff, not a correctness bug).

    # LHS: lhs[(n, oh), (kh, wp, cin)] = x_pad[n, oh*stride + kh*dilation, wp, cin]
    # (the only "strided" slicing lives here in the wrapper, never in the kernel)
    taps = [x[:, kh * dilation: kh * dilation + (OH - 1) * stride + 1: stride, :, :]
            for kh in range(KH)]                                  # each (N, OH, Wp, Cin)
    lhs = jnp.stack(taps, axis=2).reshape(M, K_tot)               # (M, KH*Wp*Cin)

    # RHS: block-Toeplitz weight so the matmul output is natively (M, OW*Cout).
    # W_toep[(kh, wp, cin), (ow, cout)] = w[kh, kw, cin, cout] if wp == ow*stride+kw*dil
    w_hwio = jnp.transpose(w_full, (2, 3, 1, 0))                  # (KH, KW, Cin, Cout)
    sel = np.zeros((KW, OW, Wp), np.float32)                      # static selector
    for kw in range(KW):
        for ow in range(OW):
            sel[kw, ow, ow * stride + kw * dilation] = 1.0
    w_toep = jnp.einsum('hkco,kwp->hpcwo', w_hwio, jnp.asarray(sel))
    w_toep = w_toep.reshape(K_tot, OWC)

    # Bias tiled over ow so it broadcasts over the (ow, cout) column ordering; f32 always
    # (no bf16 VPU on v5e).
    b_row = jnp.tile(bias.astype(jnp.float32), OW).reshape(1, OWC)

    # Optional bf16 MXU operands (f32 accumulation via preferred_element_type).
    operand_dtype = jnp.bfloat16 if use_bf16_operands else jnp.float32
    lhs = lhs.astype(operand_dtype)
    w_toep = w_toep.astype(operand_dtype)
    in_itemsize = jnp.dtype(operand_dtype).itemsize

    # --- grid blocking + VMEM accounting (double-buffered) --------------------------
    grid_steps = _choose_grid_steps(M, K_tot, OWC, in_itemsize)
    m_blk = M // grid_steps
    footprint = _footprint_bytes(m_blk, K_tot, OWC, in_itemsize)
    # floor at 16 MiB (v5e default scope), cap at 32 MiB (v7x default scope / 64 MiB phys)
    vmem_limit = int(min(max(2 * footprint, 16 << 20), 32 << 20))

    out_2d = pl.pallas_call(
        _qconv_mm_kernel,
        out_shape=jax.ShapeDtypeStruct((M, OWC), jnp.float32),
        grid_spec=pltpu.PrefetchScalarGridSpec(
            num_scalar_prefetch=0,
            grid=(grid_steps,),
            in_specs=[
                pl.BlockSpec((m_blk, K_tot), lambda i: (i, 0)),   # row-block of LHS
                pl.BlockSpec((K_tot, OWC), lambda i: (0, 0)),     # weight (revisited)
                pl.BlockSpec((1, OWC), lambda i: (0, 0)),         # bias (revisited)
            ],
            out_specs=pl.BlockSpec((m_blk, OWC), lambda i: (i, 0)),
        ),
        compiler_params=pltpu.CompilerParams(
            dimension_semantics=("parallel",),
            vmem_limit_bytes=vmem_limit),
    )(lhs, w_toep, b_row)

    # (M, OW*Cout) -> NCHW.  Column ordering is (ow, cout), rows are (n, oh).
    out_nhwc = out_2d.reshape(N, OH, OW, Cout)
    return jnp.transpose(out_nhwc, (0, 3, 1, 2))


# ----------------------------------------------------------------------------
# Reference (pure JAX) for verification
# ----------------------------------------------------------------------------
def quaternion_conv2d_ref(x_nchw, r_w, i_w, j_w, k_w, bias,
                          stride=1, padding=0, dilation=1):
    w_full = build_quaternion_weight(r_w, i_w, j_w, k_w)
    out = jax.lax.conv_general_dilated(
        x_nchw, w_full,
        window_strides=(stride, stride),
        padding=((padding, padding), (padding, padding)),
        rhs_dilation=(dilation, dilation),
        dimension_numbers=("NCHW", "OIHW", "NCHW"))
    return out + bias[None, :, None, None]


if __name__ == "__main__":
    # Module config: QuaternionConv2dUni(in_channels=8, out_channels=8,
    #                                    kernel_size=3, stride=1, padding=1)
    in_channels, out_channels = 8, 8
    kernel_size, stride, padding, dilation = 3, 1, 1, 1
    N, H, W = 2, 16, 16

    # deterministic parameters (unitary init, seed fixed)
    np_rng = np.random.RandomState(0)
    r_np, i_np, j_np, k_np = unitary_init(
        out_channels // 4, in_channels // 4, (kernel_size, kernel_size), np_rng)
    r_w = jnp.asarray(r_np)
    i_w = jnp.asarray(i_np)
    j_w = jnp.asarray(j_np)
    k_w = jnp.asarray(k_np)
    bias = jnp.zeros((out_channels,), jnp.float32)   # reset_parameters zeroes the bias

    # deterministic input, NCHW like PyTorch
    key = jax.random.PRNGKey(0)
    x = jax.random.normal(key, (N, in_channels, H, W), dtype=jnp.float32)

    out = quaternion_conv2d_pallas(x, r_w, i_w, j_w, k_w, bias,
                                   stride=stride, padding=padding, dilation=dilation)
    out = jax.block_until_ready(out)

    ref = quaternion_conv2d_ref(x, r_w, i_w, j_w, k_w, bias,
                                stride=stride, padding=padding, dilation=dilation)
    ref = jax.block_until_ready(ref)
    assert out.shape == ref.shape == (N, out_channels, H, W)
    np.testing.assert_allclose(np.asarray(out), np.asarray(ref), rtol=1e-4, atol=1e-4)

    print("KERNEL_OK")
</pallas_src>

<mosaic_0001>
module attributes {stable_mosaic.version = 11 : i64} {
  func.func @_qconv_mm_kernel(%arg0: i32, %arg1: memref<32x432xf32, #tpu.memory_space<vmem>>, %arg2: memref<432x128xf32, #tpu.memory_space<vmem>>, %arg3: memref<1x128xf32, #tpu.memory_space<vmem>>, %arg4: memref<32x128xf32, #tpu.memory_space<vmem>>) attributes {dimension_semantics = [#tpu.dimension_semantics<parallel>], iteration_bounds = array<i64: 1>, scalar_prefetch = 0 : i64, scratch_operands = 0 : i64, tpu.core_type = #tpu.core_type<tc>, window_params = [{transform_indices = @transform_0, window_bounds = array<i64: 32, 432>}, {pipeline_mode = #tpu.pipeline_mode<synchronous>, transform_indices = @transform_1, window_bounds = array<i64: 432, 128>}, {pipeline_mode = #tpu.pipeline_mode<synchronous>, transform_indices = @transform_2, window_bounds = array<i64: 1, 128>}, {transform_indices = @transform_3, window_bounds = array<i64: 32, 128>}]} {
    %c0 = arith.constant 0 : index
    %c0_0 = arith.constant 0 : index
    %0 = vector.load %arg1[%c0, %c0_0] : memref<32x432xf32, #tpu.memory_space<vmem>>, vector<32x432xf32>
    %c0_1 = arith.constant 0 : index
    %c0_2 = arith.constant 0 : index
    %1 = vector.load %arg2[%c0_1, %c0_2] : memref<432x128xf32, #tpu.memory_space<vmem>>, vector<432x128xf32>
    %cst = arith.constant dense<0.000000e+00> : vector<32x128xf32>
    %2 = tpu.matmul %0, %1, %cst {dimension_numbers = #tpu.dot_dimension_numbers<[1], [0], [0], [1], [0, 0, 1, 1], [], []>} : vector<32x432xf32>, vector<432x128xf32>, vector<32x128xf32> -> vector<32x128xf32>
    %c0_3 = arith.constant 0 : index
    %c0_4 = arith.constant 0 : index
    %3 = vector.load %arg3[%c0_3, %c0_4] : memref<1x128xf32, #tpu.memory_space<vmem>>, vector<1x128xf32>
    %4 = vector.broadcast %3 : vector<1x128xf32> to vector<32x128xf32>
    %5 = arith.addf %2, %4 : vector<32x128xf32>
    %c0_5 = arith.constant 0 : index
    %c0_6 = arith.constant 0 : index
    %6 = vector.load %arg4[%c0_5, %c0_6] : memref<32x128xf32, #tpu.memory_space<vmem>>, vector<32x128xf32>
    tpu.vector_store %arg4[%c0_5, %c0_6], %5 {strides = array<i32>} : memref<32x128xf32, #tpu.memory_space<vmem>>, vector<32x128xf32>,
    return
  }
  func.func @transform_0(%arg0: i32) -> (i32, i32) {
    %c0_i32 = arith.constant 0 : i32
    %c0_i32_0 = arith.constant 0 : i32
    return %arg0, %c0_i32 : i32, i32
  }
  func.func @transform_1(%arg0: i32) -> (i32, i32) {
    %c0_i32 = arith.constant 0 : i32
    %c0_i32_0 = arith.constant 0 : i32
    %c0_i32_1 = arith.constant 0 : i32
    return %c0_i32, %c0_i32_0 : i32, i32
  }
  func.func @transform_2(%arg0: i32) -> (i32, i32) {
    %c0_i32 = arith.constant 0 : i32
    %c0_i32_0 = arith.constant 0 : i32
    %c0_i32_1 = arith.constant 0 : i32
    return %c0_i32, %c0_i32_0 : i32, i32
  }
  func.func @transform_3(%arg0: i32) -> (i32, i32) {
    %c0_i32 = arith.constant 0 : i32
    %c0_i32_0 = arith.constant 0 : i32
    return %arg0, %c0_i32 : i32, i32
  }
}

</mosaic_0001>

<bundles_post_ra>
// kernel: tpu_custom_call.1
= control target key start
LH: loop header
LB: loop body
LE: loop exit
PB: predicated region body
PF: predicated region fallthrough
CT: control target
= control target key end

     0   :  { %8 = vsyncpa [#allocation3], 0  ;;  %s413_s0 = inlined_call_operand.hbm [shape: f32[32,432], index: 0, kind: input, shape index: {}]   ;;  %s414_s1 = inlined_call_operand.hbm [shape: f32[432,128], index: 1, kind: input, shape index: {}]   ;;  %s415_s2 = inlined_call_operand.vmem [shape: f32[1,128], index: 2, kind: input, shape index: {}]   ;;  %s416_s3 = inlined_call_operand.hbm [shape: f32[32,128], index: 3, kind: output, shape index: {}]  }
   0x1   :  { %9 = vsyncpa [#allocation6], 0 }
   0x2   :  { %10 = vsyncpa [#allocation4], 0  ;;  %s15_s14 = sshll.u32 %s413_s0, 4  ;;  %s364_s15 = smov [#allocation2]   ;;  %s16_s14 = int_to_ptr.hbm [resolvable:$true] %s15_s14 }
   0x3   :  { %s17_s16 = sshll.u32 %s364_s15, 4  ;;  %s28_s19 = sshll.u32 %s414_s1, 4  ;;  %s18_s16 = int_to_ptr.vmem [resolvable:$true] %s17_s16  ;;  %s29_s19 = int_to_ptr.hbm [resolvable:$true] %s28_s19 }
   0x4   :  { %s365_s20 = smov 512   ;;  %s366_s21 = smov 32  }
   0x5   :  { %23 = dma.hbm_to_vmem [thread:$0]  %s16_s14, 2048, %s18_s16, [#allocation3], %s365_s20, %s365_s20, %s366_s21  }
   0x6   :  { %s367_s22 = smov [#allocation5]   ;;  %s368_s24 = smov 128  }
   0x7   :  { %s30_s23 = sshll.u32 %s367_s22, 4  ;;  %s369_s25 = smov 8   ;;  %s31_s23 = int_to_ptr.vmem [resolvable:$true] %s30_s23 }
   0x8   :  { %36 = dma.hbm_to_vmem [thread:$0]  %s29_s19, 6912, %s31_s23, [#allocation6], %s368_s24, %s368_s24, %s369_s25  }
   0x9   :  { %358 = dma.done.wait [#allocation3], 2048  }
   0xa   :  { %359 = vsyncadd [#allocation3], 4294965248 }
   0xb   :  { %360 = dma.done.wait [#allocation6], 6912  }
   0xc   :  { %361 = vsyncadd [#allocation6], 4294960384  ;;  %v110_v0 = vld [vmem:[#allocation5 + $0x178] sm:$0xff]  ;;  %v109_v2 = vld [vmem:[#allocation5 + $0x170] sm:$0xff]  ;;  %vm121_vm0 = vcmask 392192   ;;  %s260_s29 = sshll.u32 %s416_s3, 4  ;;  %s261_s29 = int_to_ptr.hbm [resolvable:$true] %s260_s29 }
   0xd   :  { %v78_v1 = vld [vmem:[#allocation5 + $0x78] sm:$0xff]  ;;  %192 = vmatpush.msra.mxu2 %v110_v0  ;;  %v77_v3 = vld [vmem:[#allocation5 + $0x70] sm:$0xff]  ;;  %v108_v5 = vld [vmem:[#allocation5 + $0x168] sm:$0xff] }
   0xe   :  { %134 = vmatpush.msra.mxu0 %v78_v1  ;;  %v94_v4 = vld [vmem:[#allocation5 + $0xf8] sm:$0xff]  ;;  %v76_v6 = vld [vmem:[#allocation5 + $0x68] sm:$0xff]  ;;  %v93_v7 = vld [vmem:[#allocation5 + $0xf0] sm:$0xff] }
   0xf   :  { %163 = vmatpush.msra.mxu1 %v94_v4  ;;  %193 = vmatpush.msra.mxu2 %v109_v2  ;;  %v92_v8 = vld [vmem:[#allocation5 + $0xe8] sm:$0xff]  ;;  %v107_v9 = vld [vmem:[#allocation5 + $0x160] sm:$0xff]  ;;  %v106_v12 = vld [vmem:[#allocation5 + $0x158] sm:$0xff] }
  0x10   :  { %135 = vmatpush.msra.mxu0 %v77_v3  ;;  %v75_v10 = vld [vmem:[#allocation5 + $0x60] sm:$0xff]  ;;  %v74_v13 = vld [vmem:[#allocation5 + $0x58] sm:$0xff]  ;;  %v105_v15 = vld [vmem:[#allocation5 + $0x150] sm:$0xff] }
  0x11   :  { %164 = vmatpush.msra.mxu1 %v93_v7  ;;  %194 = vmatpush.msra.mxu2 %v108_v5  ;;  %v91_v11 = vld [vmem:[#allocation5 + $0xe0] sm:$0xff]  ;;  %v90_v14 = vld [vmem:[#allocation5 + $0xd8] sm:$0xff]  ;;  %v73_v16 = vld [vmem:[#allocation5 + $0x50] sm:$0xff] }
  0x12   :  { %136 = vmatpush.msra.mxu0 %v76_v6  ;;  %v89_v17 = vld [vmem:[#allocation5 + $0xd0] sm:$0xff]  ;;  %v104_v18 = vld [vmem:[#allocation5 + $0x148] sm:$0xff]  ;;  %v103_v22 = vld [vmem:[#allocation5 + $0x140] sm:$0xff] }
  0x13   :  { %165 = vmatpush.msra.mxu1 %v92_v8  ;;  %195 = vmatpush.msra.mxu2 %v107_v9  ;;  %v72_v19 = vld [vmem:[#allocation5 + $0x48] sm:$0xff]  ;;  %v71_v23 = vld [vmem:[#allocation5 + $0x40] sm:$0xff]  ;;  %v114_v26 = vld [vmem:[#allocation5 + $0x198] sm:$0xff] }
  0x14   :  { %137 = vmatpush.msra.mxu0 %v75_v10  ;;  %v88_v20 = vld [vmem:[#allocation5 + $0xc8] sm:$0xff]  ;;  %v115_v24 = vld [vmem:[#allocation5 + $0x1a0] sm:$0xff]  ;;  %v102_v27 = vld [vmem:[#allocation5 + $0x138] sm:$0xff] }
  0x15   :  { %166 = vmatpush.msra.mxu1 %v91_v11  ;;  %196 = vmatpush.msra.mxu2 %v106_v12  ;;  %v116_v21 = vld [vmem:[#allocation5 + $0x1a8] sm:$0xff]  ;;  %v87_v25 = vld [vmem:[#allocation5 + $0xc0] sm:$0xff]  ;;  %v70_v28 = vld [vmem:[#allocation5 + $0x38] sm:$0xff] }
  0x16   :  { %138 = vmatpush.msra.mxu0 %v74_v13  ;;  %231 = vmatpush.msra.mxu3 %v116_v21  ;;  %v86_v29 = vld [vmem:[#allocation5 + $0xb8] sm:$0xff]  ;;  %v113_v30 = vld [vmem:[#allocation5 + $0x190] sm:$0xff]  ;;  %v112_v34 = vld [vmem:[#allocation5 + $0x188] sm:$0xff] }
  0x17   :  { %167 = vmatpush.msra.mxu1 %v90_v14  ;;  %197 = vmatpush.msra.mxu2 %v105_v15  ;;  %v101_v31 = vld [vmem:[#allocation5 + $0x130] sm:$0xff]  ;;  %v100_v35 = vld [vmem:[#allocation5 + $0x128] sm:$0xff]  ;;  %v111_v38 = vld [vmem:[#allocation5 + $0x180] sm:$0xff] }
  0x18   :  { %139 = vmatpush.msra.mxu0 %v73_v16  ;;  %232 = vmatpush.msra.mxu3 %v115_v24  ;;  %v69_v32 = vld [vmem:[#allocation5 + $0x30] sm:$0xff]  ;;  %v68_v36 = vld [vmem:[#allocation5 + $0x28] sm:$0xff]  ;;  %v99_v39 = vld [vmem:[#allocation5 + $0x120] sm:$0xff] }
  0x19   :  { %168 = vmatpush.msra.mxu1 %v89_v17  ;;  %198 = vmatpush.msra.mxu2 %v104_v18  ;;  %v85_v33 = vld [vmem:[#allocation5 + $0xb0] sm:$0xff]  ;;  %v84_v37 = vld [vmem:[#allocation5 + $0xa8] sm:$0xff]  ;;  %v67_v40 = vld [vmem:[#allocation5 + $0x20] sm:$0xff] }
  0x1a   :  { %140 = vmatpush.msra.mxu0 %v72_v19  ;;  %233 = vmatpush.msra.mxu3 %v114_v26  ;;  %v83_v41 = vld [vmem:[#allocation5 + $0xa0] sm:$0xff]  ;;  %v50_v42 = vld [vmem:[#allocation2 + $0x18] sm:$0xff]  ;;  %v97_v46 = vld [vmem:[#allocation5 + $0x110] sm:$0xff] }
  0x1b   :  { %169 = vmatpush.msra.mxu1 %v88_v20  ;;  %199 = vmatpush.msra.mxu2 %v103_v22  ;;  %v98_v43 = vld [vmem:[#allocation5 + $0x118] sm:$0xff]  ;;  %v65_v47 = vld [vmem:[#allocation5 + $0x10] sm:$0xff]  ;;  %v96_v49 = vld [vmem:[#allocation5 + $0x108] sm:$0xff] }
  0x1c   :  { %141 = vmatpush.msra.mxu0 %v71_v23  ;;  %234 = vmatpush.msra.mxu3 %v113_v30  ;;  %v66_v44 = vld [vmem:[#allocation5 + $0x18] sm:$0xff]  ;;  %v81_v48 = vld [vmem:[#allocation5 + $0x90] sm:$0xff]  ;;  %v64_v50 = vld [vmem:[#allocation5 + $0x8] sm:$0xff] }
  0x1d   :  { %170 = vmatpush.msra.mxu1 %v87_v25  ;;  %200 = vmatpush.msra.mxu2 %v102_v27  ;;  %v82_v45 = vld [vmem:[#allocation5 + $0x98] sm:$0xff]  ;;  %v80_v51 = vld [vmem:[#allocation5 + $0x88] sm:$0xff]  ;;  %v95_v52 = vld [vmem:[#allocation5 + $0x100] sm:$0xff] }
  0x1e   :  { %142 = vmatpush.msra.mxu0 %v70_v28  ;;  %235 = vmatpush.msra.mxu3 %v112_v34  ;;  %v63_v53 = vld [vmem:[#allocation5] sm:$0xff]  ;;  %v49_v54 = vld [vmem:[#allocation2 + $0x10] sm:$0xff]  ;;  %v54_v57 = vld [vmem:[#allocation2 + $0x38] sm:$0xff] }
  0x1f   :  { %171 = vmatpush.msra.mxu1 %v86_v29  ;;  %201 = vmatpush.msra.mxu2 %v101_v31  ;;  %v47_v55 = vld [vmem:[#allocation2] sm:$0xff]  ;;  %v48_v58 = vld [vmem:[#allocation2 + $0x8] sm:$0xff]  ;;  %v53_v59 = vld [vmem:[#allocation2 + $0x30] sm:$0xff] }
  0x20   :  { %143 = vmatpush.msra.mxu0 %v69_v32  ;;  %236 = vmatpush.msra.mxu3 %v111_v38  ;;  %v79_v56 = vld [vmem:[#allocation5 + $0x80] sm:$0xff]  ;;  %v58_v61 = vld [vmem:[#allocation2 + $0x58] sm:$0xff]  ;;  %v52_v62 = vld [vmem:[#allocation2 + $0x28] sm:$0xff] }
  0x21   :  { %172 = vmatpush.msra.mxu1 %v85_v33  ;;  %202 = vmatpush.msra.mxu2 %v100_v35  ;;  %v51_v60 = vld [vmem:[#allocation2 + $0x20] sm:$0xff]  ;;  %v57_v63 = vld [vmem:[#allocation2 + $0x50] sm:$0xff]  ;;  %v62_v1 = vld [vmem:[#allocation2 + $0x78] sm:$0xff] }
  0x22   :  { %144 = vmatpush.msra.mxu0 %v68_v36  ;;  %274 = vmatmul.msk.f32.vlgmr.msra.gmra.mxu3 %vm121_vm0, %v50_v42  ;;  %v55_v0 = vld [vmem:[#allocation2 + $0x40] sm:$0xff]  ;;  %v56_v2 = vld [vmem:[#allocation2 + $0x48] sm:$0xff]  ;;  %v61_v3 = vld [vmem:[#allocation2 + $0x70] sm:$0xff] }
  0x23   :  { %173 = vmatpush.msra.mxu1 %v84_v37  ;;  %203 = vmatpush.msra.mxu2 %v99_v39  ;;  %v59_v4 = vld [vmem:[#allocation2 + $0x60] sm:$0xff]  ;;  %v60_v5 = vld [vmem:[#allocation2 + $0x68] sm:$0xff] }
  0x24   :  { %145 = vmatpush.msra.mxu0 %v67_v40  ;;  %v285_v6 = vld [vmem:[%s415_s2] ss:$0 sm:$0xff]  ;;  %s370_s2 = smov [#allocation7]  }
  0x25   :  { %174 = vmatpush.msra.mxu1 %v83_v41  ;;  %204 = vmatpush.msra.mxu2 %v98_v43  ;;  %s258_s26 = sshll.u32 %s370_s2, 4  ;;  %s259_s26 = int_to_ptr.vmem [resolvable:$true] %s258_s26 }
  0x26   :  { %146 = vmatpush.msra.mxu0 %v66_v44 }
  0x27   :  { %175 = vmatpush.msra.mxu1 %v82_v45  ;;  %205 = vmatpush.msra.mxu2 %v97_v46 }
  0x28   :  { %147 = vmatpush.msra.mxu0 %v65_v47 }
  0x29   :  { %176 = vmatpush.msra.mxu1 %v81_v48  ;;  %206 = vmatpush.msra.mxu2 %v96_v49 }
  0x2a   :  { %148 = vmatpush.msra.mxu0 %v64_v50  ;;  %275 = vmatmul.msk.f32.gmra.mxu3 %vm121_vm0, %v54_v57 }
  0x2b   :  { %177 = vmatpush.msra.mxu1 %v80_v51  ;;  %207 = vmatpush.msra.mxu2 %v95_v52 }
  0x2c   :  { %149 = vmatpush.msra.mxu0 %v63_v53  ;;  %208 = vmatmul.f32.vlgmr.msra.gmra.mxu2 %v49_v54 }
  0x2d   :  { %150 = vmatmul.f32.vlgmr.msra.gmra.mxu0 %v47_v55  ;;  %178 = vmatpush.msra.mxu1 %v79_v56 }
  0x2e   :  { %179 = vmatmul.f32.vlgmr.msra.gmra.mxu1 %v48_v58 }
  0x32   :  { %276 = vmatmul.msk.f32.gmra.mxu3 %vm121_vm0, %v58_v61 }
  0x34   :  { %211 = vmatmul.f32.gmra.mxu2 %v53_v59 }
  0x35   :  { %153 = vmatmul.f32.gmra.mxu0 %v51_v60 }
  0x36   :  { %182 = vmatmul.f32.gmra.mxu1 %v52_v62 }
  0x3a   :  { %277 = vmatmul.msk.f32.gmra.mxu3 %vm121_vm0, %v62_v1 }
  0x3c   :  { %214 = vmatmul.f32.gmra.mxu2 %v57_v63 }
  0x3d   :  { %156 = vmatmul.f32.gmra.mxu0 %v55_v0 }
  0x3e   :  { %185 = vmatmul.f32.gmra.mxu1 %v56_v2 }
  0x44   :  { %217 = vmatmul.f32.gmra.mxu2 %v61_v3 }
  0x45   :  { %159 = vmatmul.f32.gmra.mxu0 %v59_v4 }
  0x46   :  { %188 = vmatmul.f32.gmra.mxu1 %v60_v5 }
  0xa5   :  { %v238_v8 = vpop.f32.mrf.mxu3 }
  0xaa   :  { %v151_v7 = vpop.f32.mrf.mxu0 }
  0xab   :  { %v152_v9 = vadd.f32 %v285_v6, %v151_v7  ;;  %v180_v10 = vpop.f32.mrf.mxu1 }
  0xad   :  { %v181_v11 = vadd.f32 %v180_v10, %v152_v9  ;;  %v241_v18 = vpop.f32.mrf.mxu3 }
  0xaf   :  { %v209_v12 = vpop.f32.mrf.mxu2 }
  0xb0   :  { %v210_v13 = vadd.f32 %v209_v12, %v181_v11 }
  0xb2   :  { %v154_v14 = vpop.f32.mrf.mxu0  ;;  %v239_v15 = vadd.f32 %v238_v8, %v210_v13 }
  0xb3   :  { %v155_v16 = vadd.f32 %v285_v6, %v154_v14  ;;  %v183_v17 = vpop.f32.mrf.mxu1 }
  0xb4   :  { %250 = vst [vmem:[#allocation7] sm:$0xff] %v239_v15 }
  0xb5   :  { %v184_v19 = vadd.f32 %v183_v17, %v155_v16  ;;  %v244_v27 = vpop.f32.mrf.mxu3 }
  0xb7   :  { %v212_v20 = vpop.f32.mrf.mxu2 }
  0xb8   :  { %v213_v21 = vadd.f32 %v212_v20, %v184_v19 }
  0xba   :  { %v157_v22 = vpop.f32.mrf.mxu0  ;;  %v242_v23 = vadd.f32 %v241_v18, %v213_v21 }
  0xbb   :  { %v158_v24 = vadd.f32 %v285_v6, %v157_v22  ;;  %v186_v25 = vpop.f32.mrf.mxu1 }
  0xbc   :  { %251 = vst [vmem:[#allocation7 + $0x8] sm:$0xff] %v242_v23 }
  0xbd   :  { %v187_v26 = vadd.f32 %v186_v25, %v158_v24  ;;  %v247_v36 = vpop.f32.mrf.mxu3 }
  0xbf   :  { %v215_v28 = vpop.f32.mrf.mxu2 }
  0xc0   :  { %v216_v29 = vadd.f32 %v215_v28, %v187_v26 }
  0xc2   :  { %v160_v30 = vpop.f32.mrf.mxu0  ;;  %v245_v31 = vadd.f32 %v244_v27, %v216_v29 }
  0xc3   :  { %v161_v32 = vadd.f32 %v285_v6, %v160_v30  ;;  %v189_v33 = vpop.f32.mrf.mxu1 }
  0xc4   :  { %252 = vst [vmem:[#allocation7 + $0x10] sm:$0xff] %v245_v31 }
  0xc5   :  { %v190_v34 = vadd.f32 %v189_v33, %v161_v32 }
  0xc7   :  { %v218_v35 = vpop.f32.mrf.mxu2 }
  0xc8   :  { %v219_v37 = vadd.f32 %v218_v35, %v190_v34 }
  0xca   :  { %v248_v38 = vadd.f32 %v247_v36, %v219_v37 }
  0xcc   :  { %253 = vst [vmem:[#allocation7 + $0x18] sm:$0xff] %v248_v38 }
  0xcd   :  { %266 = dma.vmem_to_hbm [thread:$0]  %s259_s26, 512, %s261_s29, [#allocation4], %s368_s24, %s368_s24, %s369_s25  }
  0xce   :  { %362 = dma.done.wait [#allocation4], 512  }
  0xcf   :  { %363 = vsyncadd [#allocation4], 4294966784 }
  0xd0   :  { %271 = vsyncpa [#allocation3], 1 }
  0xd1   :  { %272 = vsyncpa [#allocation6], 1 }
  0xd2   :  { %273 = vsyncpa [#allocation4], 1 }

</bundles_post_ra>
